<compile_context>
chip_gen: v7x
topology: tpu7x:2x2x1
jax: 0.10.0
libtpu: 0.0.40
codegen_flags: <defaults>
</compile_context>

<pallas_src>
import functools
import numpy as np
import jax
import jax.numpy as jnp
from jax.experimental import pallas as pl
from jax.experimental.pallas import tpu as pltpu


def _round_up(x, m):
    return ((x + m - 1) // m) * m


def _hidden_layer_size(n_in, n_out):
    # matches: int(np.round(np.sqrt(np.multiply(n_in, n_out))) + 4)
    return int(np.round(np.sqrt(np.multiply(n_in, n_out))) + 4)


def init_linear_net_params(key, n_in, n_out, hidden_layers, hidden_layer_size=None):
    """Deterministic parameter init mimicking torch.nn.Linear default
    (U(-1/sqrt(fan_in), 1/sqrt(fan_in)) for weight and bias).
    Weights are stored already transposed: (in, out)."""
    h = _hidden_layer_size(n_in, n_out) if hidden_layer_size is None else hidden_layer_size
    dims = []
    for i in range(hidden_layers):
        dims.append((n_in if i == 0 else h, h))
    dims.append((h, n_out))

    params = []
    for (fan_in, fan_out) in dims:
        key, kw, kb = jax.random.split(key, 3)
        bound = 1.0 / np.sqrt(fan_in)
        w = jax.random.uniform(kw, (fan_in, fan_out), jnp.float32, -bound, bound)
        b = jax.random.uniform(kb, (1, fan_out), jnp.float32, -bound, bound)
        params.append((w, b))
    return params


def _pack_params(params, dpad):
    """Pack all (W, b) pairs into one (L, dpad+8, dpad) f32 slab.
    Rows [0:dpad] of layer i hold W_i (zero-padded), row dpad holds b_i."""
    n_layers = len(params)
    slab = jnp.zeros((n_layers, dpad + 8, dpad), jnp.float32)
    for i, (w, b) in enumerate(params):
        fan_in, fan_out = w.shape
        slab = slab.at[i, :fan_in, :fan_out].set(w.astype(jnp.float32))
        slab = slab.at[i, dpad, :fan_out].set(jnp.reshape(b, (-1,)).astype(jnp.float32))
    return slab


def _linear_net_kernel(n_layers, dpad, tanh, softmax, relu, sigmoid,
                       x_ref, params_ref, out_ref):
    # x_ref:      (TB, dpad)                 current batch tile (lane-dense)
    # params_ref: (n_layers, dpad+8, dpad)   packed weight/bias slab (resident)
    # out_ref:    (TB, dpad)
    h = x_ref[...]
    for i in range(n_layers):                    # static Python unroll
        w = params_ref[i, 0:dpad, :]             # (dpad, dpad) static slice
        b = params_ref[i, dpad:dpad + 1, :]      # (1, dpad)    static slice
        h = jnp.dot(h, w, preferred_element_type=jnp.float32) + b
        if i != n_layers - 1:
            h = jnp.maximum(h, 0.0)
        # Dropout after layer 0: identity in eval mode (see TODO at top).

    # Optional final activations (static Python flags baked into the kernel),
    # applied in the same order as the PyTorch module.
    if tanh:
        h = jnp.tanh(h)
    if softmax:
        # torch.softmax(x, dim=0): softmax over the batch axis.  The wrapper
        # guarantees the full batch lives in this single block.
        m = jnp.max(h, axis=0, keepdims=True)
        e = jnp.exp(h - m)
        denom = jnp.sum(e, axis=0, keepdims=True)
        h = e * pl.reciprocal(denom, approx=True)
    if relu:
        h = jnp.maximum(h, 0.0)
    if sigmoid:
        h = jax.nn.sigmoid(h)

    out_ref[...] = h.astype(out_ref.dtype)


def linear_net_forward(x, params, *, tanh=False, softmax=False, relu=False,
                       sigmoid=False, batch_tile=512):
    """Runs the whole MLP in a single Pallas TPU kernel (one call per batch)."""
    n_layers = len(params)
    batch, n_in = x.shape
    n_out = params[-1][0].shape[1]

    # Single lane-dense padded feature width for every layer.
    dpad = _round_up(max(max(w.shape) for w, _ in params + [(x.T, None)]), 128)

    slab = _pack_params(params, dpad)

    # Batch tiling.  softmax(dim=0) couples rows across the whole batch, so in
    # that case the batch must be a single block.  Otherwise tile in
    # `batch_tile`-row blocks (multiple of 8) and pad batch up; padded rows are
    # row-independent garbage that gets sliced off below.
    if softmax or batch <= batch_tile:
        tb = batch                    # block == full dim -> (8,128) rule waived
        pb = batch
    else:
        tb = _round_up(batch_tile, 8)
        pb = _round_up(batch, tb)

    xp = jnp.zeros((pb, dpad), jnp.float32).at[:batch, :n_in].set(
        x.astype(jnp.float32))

    kernel = functools.partial(_linear_net_kernel, n_layers, dpad,
                               tanh, softmax, relu, sigmoid)

    out_padded = pl.pallas_call(
        kernel,
        out_shape=jax.ShapeDtypeStruct((pb, dpad), jnp.float32),
        grid=(pb // tb,),
        in_specs=[
            pl.BlockSpec((tb, dpad), lambda i: (i, 0)),                  # x tile
            pl.BlockSpec((n_layers, dpad + 8, dpad), lambda i: (0, 0, 0)),  # slab
        ],
        out_specs=pl.BlockSpec((tb, dpad), lambda i: (i, 0)),
        compiler_params=pltpu.CompilerParams(
            dimension_semantics=("parallel",)),
    )(xp, slab)

    return out_padded[:batch, :n_out]


def _reference_forward(x, params, *, tanh=False, softmax=False, relu=False,
                       sigmoid=False):
    h = x
    for i, (w, b) in enumerate(params):
        h = h @ w + b
        if i != len(params) - 1:
            h = jnp.maximum(h, 0.0)
    if tanh:
        h = jnp.tanh(h)
    if softmax:
        h = jax.nn.softmax(h, axis=0)
    if relu:
        h = jnp.maximum(h, 0.0)
    if sigmoid:
        h = jax.nn.sigmoid(h)
    return h


if __name__ == "__main__":
    key = jax.random.PRNGKey(0)

    # Small shapes implied by the module's __init__:
    n_in, n_out, hidden_layers = 4, 3, 2   # hidden size = round(sqrt(12)) + 4 = 7... -> 8
    batch = 8

    kx, kx2, kp = jax.random.split(key, 3)
    x = jax.random.normal(kx, (batch, n_in), jnp.float32)
    params = init_linear_net_params(kp, n_in, n_out, hidden_layers)

    # 1) default flags (all False), single batch block
    out = jax.block_until_ready(linear_net_forward(x, params))
    ref = _reference_forward(x, params)
    np.testing.assert_allclose(np.asarray(out), np.asarray(ref),
                               rtol=1e-5, atol=1e-5)

    # 2) multi-tile grid + batch padding path (batch=20, tile=16 -> grid of 2)
    x_big = jax.random.normal(kx2, (20, n_in), jnp.float32)
    out2 = jax.block_until_ready(
        linear_net_forward(x_big, params, relu=True, batch_tile=16))
    ref2 = _reference_forward(x_big, params, relu=True)
    np.testing.assert_allclose(np.asarray(out2), np.asarray(ref2),
                               rtol=1e-5, atol=1e-5)

    # 3) tanh + sigmoid final activations
    out3 = jax.block_until_ready(
        linear_net_forward(x, params, tanh=True, sigmoid=True))
    ref3 = _reference_forward(x, params, tanh=True, sigmoid=True)
    np.testing.assert_allclose(np.asarray(out3), np.asarray(ref3),
                               rtol=1e-5, atol=1e-5)

    # 4) softmax over dim=0 (single batch block; approx reciprocal -> looser tol)
    out4 = jax.block_until_ready(linear_net_forward(x, params, softmax=True))
    ref4 = _reference_forward(x, params, softmax=True)
    np.testing.assert_allclose(np.asarray(out4), np.asarray(ref4),
                               rtol=2e-3, atol=2e-3)

    print("KERNEL_OK")
</pallas_src>

<mosaic_0001>
module attributes {stable_mosaic.version = 11 : i64} {
  func.func @_linear_net_kernel(%arg0: i32, %arg1: memref<8x128xf32, #tpu.memory_space<vmem>>, %arg2: memref<3x136x128xf32, #tpu.memory_space<vmem>>, %arg3: memref<8x128xf32, #tpu.memory_space<vmem>>) attributes {dimension_semantics = [#tpu.dimension_semantics<parallel>], iteration_bounds = array<i64: 1>, scalar_prefetch = 0 : i64, scratch_operands = 0 : i64, tpu.core_type = #tpu.core_type<tc>, window_params = [{transform_indices = @transform_0, window_bounds = array<i64: 8, 128>}, {pipeline_mode = #tpu.pipeline_mode<synchronous>, transform_indices = @transform_1, window_bounds = array<i64: 3, 136, 128>}, {transform_indices = @transform_2, window_bounds = array<i64: 8, 128>}]} {
    %c0 = arith.constant 0 : index
    %c0_0 = arith.constant 0 : index
    %0 = vector.load %arg1[%c0, %c0_0] : memref<8x128xf32, #tpu.memory_space<vmem>>, vector<8x128xf32>
    %c0_1 = arith.constant 0 : index
    %c0_2 = arith.constant 0 : index
    %c0_3 = arith.constant 0 : index
    %1 = vector.load %arg2[%c0_1, %c0_2, %c0_3] : memref<3x136x128xf32, #tpu.memory_space<vmem>>, vector<1x128x128xf32>
    %2 = vector.shape_cast %1 : vector<1x128x128xf32> to vector<128x128xf32>
    %c0_4 = arith.constant 0 : index
    %c128 = arith.constant 128 : index
    %c0_5 = arith.constant 0 : index
    %3 = vector.load %arg2[%c0_4, %c128, %c0_5] : memref<3x136x128xf32, #tpu.memory_space<vmem>>, vector<1x1x128xf32>
    %4 = vector.shape_cast %3 : vector<1x1x128xf32> to vector<1x128xf32>
    %cst = arith.constant dense<0.000000e+00> : vector<8x128xf32>
    %5 = tpu.matmul %0, %2, %cst {dimension_numbers = #tpu.dot_dimension_numbers<[1], [0], [0], [1], [0, 0, 1, 1], [], []>} : vector<8x128xf32>, vector<128x128xf32>, vector<8x128xf32> -> vector<8x128xf32>
    %6 = vector.broadcast %4 : vector<1x128xf32> to vector<8x128xf32>
    %7 = arith.addf %5, %6 : vector<8x128xf32>
    %cst_6 = arith.constant 0.000000e+00 : f32
    %8 = vector.broadcast %cst_6 : f32 to vector<8x128xf32>
    %9 = arith.maximumf %7, %8 : vector<8x128xf32>
    %c1 = arith.constant 1 : index
    %c0_7 = arith.constant 0 : index
    %c0_8 = arith.constant 0 : index
    %10 = vector.load %arg2[%c1, %c0_7, %c0_8] : memref<3x136x128xf32, #tpu.memory_space<vmem>>, vector<1x128x128xf32>
    %11 = vector.shape_cast %10 : vector<1x128x128xf32> to vector<128x128xf32>
    %c1_9 = arith.constant 1 : index
    %c128_10 = arith.constant 128 : index
    %c0_11 = arith.constant 0 : index
    %12 = vector.load %arg2[%c1_9, %c128_10, %c0_11] : memref<3x136x128xf32, #tpu.memory_space<vmem>>, vector<1x1x128xf32>
    %13 = vector.shape_cast %12 : vector<1x1x128xf32> to vector<1x128xf32>
    %cst_12 = arith.constant dense<0.000000e+00> : vector<8x128xf32>
    %14 = tpu.matmul %9, %11, %cst_12 {dimension_numbers = #tpu.dot_dimension_numbers<[1], [0], [0], [1], [0, 0, 1, 1], [], []>} : vector<8x128xf32>, vector<128x128xf32>, vector<8x128xf32> -> vector<8x128xf32>
    %15 = vector.broadcast %13 : vector<1x128xf32> to vector<8x128xf32>
    %16 = arith.addf %14, %15 : vector<8x128xf32>
    %cst_13 = arith.constant 0.000000e+00 : f32
    %17 = vector.broadcast %cst_13 : f32 to vector<8x128xf32>
    %18 = arith.maximumf %16, %17 : vector<8x128xf32>
    %c2 = arith.constant 2 : index
    %c0_14 = arith.constant 0 : index
    %c0_15 = arith.constant 0 : index
    %19 = vector.load %arg2[%c2, %c0_14, %c0_15] : memref<3x136x128xf32, #tpu.memory_space<vmem>>, vector<1x128x128xf32>
    %20 = vector.shape_cast %19 : vector<1x128x128xf32> to vector<128x128xf32>
    %c2_16 = arith.constant 2 : index
    %c128_17 = arith.constant 128 : index
    %c0_18 = arith.constant 0 : index
    %21 = vector.load %arg2[%c2_16, %c128_17, %c0_18] : memref<3x136x128xf32, #tpu.memory_space<vmem>>, vector<1x1x128xf32>
    %22 = vector.shape_cast %21 : vector<1x1x128xf32> to vector<1x128xf32>
    %cst_19 = arith.constant dense<0.000000e+00> : vector<8x128xf32>
    %23 = tpu.matmul %18, %20, %cst_19 {dimension_numbers = #tpu.dot_dimension_numbers<[1], [0], [0], [1], [0, 0, 1, 1], [], []>} : vector<8x128xf32>, vector<128x128xf32>, vector<8x128xf32> -> vector<8x128xf32>
    %24 = vector.broadcast %22 : vector<1x128xf32> to vector<8x128xf32>
    %25 = arith.addf %23, %24 : vector<8x128xf32>
    %c0_20 = arith.constant 0 : index
    %c0_21 = arith.constant 0 : index
    %26 = vector.load %arg3[%c0_20, %c0_21] : memref<8x128xf32, #tpu.memory_space<vmem>>, vector<8x128xf32>
    tpu.vector_store %arg3[%c0_20, %c0_21], %25 {strides = array<i32>} : memref<8x128xf32, #tpu.memory_space<vmem>>, vector<8x128xf32>,
    return
  }
  func.func @transform_0(%arg0: i32) -> (i32, i32) {
    %c0_i32 = arith.constant 0 : i32
    %c0_i32_0 = arith.constant 0 : i32
    return %arg0, %c0_i32 : i32, i32
  }
  func.func @transform_1(%arg0: i32) -> (i32, i32, i32) {
    %c0_i32 = arith.constant 0 : i32
    %c0_i32_0 = arith.constant 0 : i32
    %c0_i32_1 = arith.constant 0 : i32
    %c0_i32_2 = arith.constant 0 : i32
    return %c0_i32, %c0_i32_0, %c0_i32_1 : i32, i32, i32
  }
  func.func @transform_2(%arg0: i32) -> (i32, i32) {
    %c0_i32 = arith.constant 0 : i32
    %c0_i32_0 = arith.constant 0 : i32
    return %arg0, %c0_i32 : i32, i32
  }
}

</mosaic_0001>

<bundles_post_ra>
// kernel: tpu_custom_call.1
= control target key start
LH: loop header
LB: loop body
LE: loop exit
PB: predicated region body
PF: predicated region fallthrough
CT: control target
= control target key end

     0   :  { %7 = vsyncpa [#allocation3], 0  ;;  %s740_s0 = inlined_call_operand.hbm [shape: f32[8,128], index: 0, kind: input, shape index: {}]   ;;  %s741_s1 = inlined_call_operand.hbm [shape: f32[3,136,128], index: 1, kind: input, shape index: {}]   ;;  %s742_s2 = inlined_call_operand.hbm [shape: f32[8,128], index: 2, kind: output, shape index: {}]  }
   0x1   :  { %8 = vsyncpa [#allocation6], 0 }
   0x2   :  { %9 = vsyncpa [#allocation4], 0  ;;  %s644_s9 = smov [#allocation2]   ;;  %s645_s11 = smov [#allocation5]  }
   0x3   :  { %s16_s10 = sshll.u32 %s644_s9, 4  ;;  %s25_s12 = sshll.u32 %s645_s11, 4  ;;  %s17_s10 = int_to_ptr.vmem [resolvable:$true] %s16_s10  ;;  %s667_s12 = int_to_ptr.vmem [resolvable:$true] %s25_s12 }
   0x4   :  { %s572_s15 = scalar_lea.hbm %s740_s0, 128 }
   0x5   :  { %p573_p0 = scmp.ne.s32.totalorder %s740_s0, %s572_s15  ;;  %p576_p1 = scmp.lt.u32.totalorder %s572_s15, %s740_s0 }
   0x7   :  { %p578_p2 = pnand %p576_p1, %p573_p0 }
   0x9   :  { %581 = shalt.err (!%p578_p2)
}
   0xa   :  { %s582_s20 = scalar_lea.vmem %s17_s10, 128  ;;  %p587_p4 = scmp.lt.s32.totalorder %s17_s10, %s17_s10 }
   0xb   :  { %p583_p3 = scmp.ne.s32.totalorder %s17_s10, %s582_s20  ;;  %p588_p5 = scmp.lt.s32.totalorder %s582_s20, %s582_s20 }
   0xd   :  { %p589_p6 = por %p588_p5, %p587_p4 }
   0xf   :  { %p590_p7 = pnand %p589_p6, %p583_p3 }
  0x11   :  { %593 = shalt.err (!%p590_p7)
}
  0x12   :  { %19 = dma.hbm_to_vmem [thread:$0]  %s740_s0, 128, %s17_s10, [#allocation3]  }
  0x13   :  { %s594_s25 = scalar_lea.hbm %s741_s1, 6528 }
  0x14   :  { %p595_p8 = scmp.ne.s32.totalorder %s741_s1, %s594_s25  ;;  %p598_p9 = scmp.lt.u32.totalorder %s594_s25, %s741_s1 }
  0x16   :  { %p600_p10 = pnand %p598_p9, %p595_p8 }
  0x18   :  { %603 = shalt.err (!%p600_p10)
}
  0x19   :  { %s604_s30 = scalar_lea.vmem %s667_s12, 6528  ;;  %p609_p12 = scmp.lt.s32.totalorder %s667_s12, %s667_s12 }
  0x1a   :  { %p605_p11 = scmp.ne.s32.totalorder %s667_s12, %s604_s30  ;;  %p610_p13 = scmp.lt.s32.totalorder %s604_s30, %s604_s30 }
  0x1c   :  { %p611_p0 = por %p610_p13, %p609_p12 }
  0x1e   :  { %p612_p1 = pnand %p611_p0, %p605_p11 }
  0x20   :  { %615 = shalt.err (!%p612_p1)
}
  0x21   :  { %s646_s0 = smov 128   ;;  %s647_s3 = smov 8  }
  0x22   :  { %31 = dma.hbm_to_vmem [thread:$0]  %s741_s1, 6528, %s667_s12, [#allocation6], %s646_s0, %s646_s0, %s647_s3  }
  0x23   :  { %638 = dma.done.wait [#allocation3], 128  }
  0x24   :  { %639 = vsyncadd [#allocation3], 4294967168 }
  0x25   :  { %640 = dma.done.wait [#allocation6], 6528  }
  0x26   :  { %641 = vsyncadd [#allocation6], 4294960768  ;;  %v648_v0 = vmov 0.0|0.0   ;;  %vm649_vm0 = vmmov 0   ;;  %v650_v1 = vmov 0.0   ;;  %v39_v2 = vld [vmem:[#allocation5] sm:$0xff] }
  0x27   :  { %492 = vmatprep.subr.bf16.mxu0 %v648_v0  ;;  %419 = vmatprep.mubr.msk.f32.mxu0 %vm649_vm0, %v650_v1  ;;  %v40_v3 = vld [vmem:[#allocation5 + $0x8] sm:$0xff]  ;;  %v41_v4 = vld [vmem:[#allocation5 + $0x10] sm:$0xff]  ;;  %v42_v6 = vld [vmem:[#allocation5 + $0x18] sm:$0xff]  ;;  %s651_s1 = smov [#allocation7]  }
  0x28   :  { %516 = vmatprep.subr.bf16.mxu1 %v648_v0  ;;  %454 = vmatprep.mubr.msk.f32.mxu1 %vm649_vm0, %v650_v1  ;;  %v493_v5 = vpack.c.bf16 %v40_v3, %v39_v2  ;;  %v496_v7 = vpack.c.bf16 %v42_v6, %v41_v4  ;;  %v43_v8 = vld [vmem:[#allocation5 + $0x20] sm:$0xff]  ;;  %v44_v9 = vld [vmem:[#allocation5 + $0x28] sm:$0xff]  ;;  %v133_v11 = vld [vmem:[#allocation5 + $0x90] sm:$0xff]  ;;  %s323_s6 = sshll.u32 %s651_s1, 4  ;;  %s324_s6 = int_to_ptr.vmem [resolvable:$true] %s323_s6 }
  0x29   :  { %v132_v10 = vld [vmem:[#allocation5 + $0x88] sm:$0xff]  ;;  %v134_v12 = vld [vmem:[#allocation5 + $0x98] sm:$0xff]  ;;  %v135_v13 = vld [vmem:[#allocation5 + $0xa0] sm:$0xff]  ;;  %v499_v14 = vpack.c.bf16 %v44_v9, %v43_v8  ;;  %s616_s7 = scalar_lea.vmem %s324_s6, 128  ;;  %p621_p3 = scmp.lt.s32.totalorder %s324_s6, %s324_s6 }
  0x2a   :  { %494 = vmatpush3.bf16.msra.mxu0 %v493_v5  ;;  %v517_v15 = vpack.c.bf16 %v133_v11, %v132_v10  ;;  %v45_v16 = vld [vmem:[#allocation5 + $0x30] sm:$0xff]  ;;  %v46_v17 = vld [vmem:[#allocation5 + $0x38] sm:$0xff]  ;;  %v520_v18 = vpack.c.bf16 %v135_v13, %v134_v12  ;;  %v136_v19 = vld [vmem:[#allocation5 + $0xa8] sm:$0xff]  ;;  %p617_p2 = scmp.ne.s32.totalorder %s324_s6, %s616_s7  ;;  %p622_p4 = scmp.lt.s32.totalorder %s616_s7, %s616_s7 }
  0x2b   :  { %495 = vmatprep.subr.bf16.mxu0 %v648_v0  ;;  %v137_v20 = vld [vmem:[#allocation5 + $0xb0] sm:$0xff]  ;;  %v502_v21 = vpack.c.bf16 %v46_v17, %v45_v16  ;;  %v47_v22 = vld [vmem:[#allocation5 + $0x40] sm:$0xff]  ;;  %v48_v23 = vld [vmem:[#allocation5 + $0x48] sm:$0xff] }
  0x2c   :  { %518 = vmatpush3.bf16.msra.mxu1 %v517_v15  ;;  %v523_v24 = vpack.c.bf16 %v137_v20, %v136_v19  ;;  %v138_v25 = vld [vmem:[#allocation5 + $0xb8] sm:$0xff]  ;;  %v139_v26 = vld [vmem:[#allocation5 + $0xc0] sm:$0xff]  ;;  %v505_v27 = vpack.c.bf16 %v48_v23, %v47_v22  ;;  %v49_v28 = vld [vmem:[#allocation5 + $0x50] sm:$0xff]  ;;  %p623_p5 = por %p622_p4, %p621_p3 }
  0x2d   :  { %519 = vmatprep.subr.bf16.mxu1 %v648_v0  ;;  %v50_v29 = vld [vmem:[#allocation5 + $0x58] sm:$0xff]  ;;  %v526_v30 = vpack.c.bf16 %v139_v26, %v138_v25  ;;  %v140_v31 = vld [vmem:[#allocation5 + $0xc8] sm:$0xff]  ;;  %v141_v32 = vld [vmem:[#allocation5 + $0xd0] sm:$0xff] }
  0x2e   :  { %497 = vmatpush3.bf16.msra.mxu0 %v496_v7  ;;  %v508_v33 = vpack.c.bf16 %v50_v29, %v49_v28  ;;  %v51_v34 = vld [vmem:[#allocation5 + $0x60] sm:$0xff]  ;;  %v52_v35 = vld [vmem:[#allocation5 + $0x68] sm:$0xff]  ;;  %v529_v36 = vpack.c.bf16 %v141_v32, %v140_v31  ;;  %v142_v37 = vld [vmem:[#allocation5 + $0xd8] sm:$0xff]  ;;  %p624_p6 = pnand %p623_p5, %p617_p2 }
  0x2f   :  { %498 = vmatprep.subr.bf16.mxu0 %v648_v0  ;;  %v143_v38 = vld [vmem:[#allocation5 + $0xe0] sm:$0xff]  ;;  %v511_v39 = vpack.c.bf16 %v52_v35, %v51_v34  ;;  %v53_v40 = vld [vmem:[#allocation5 + $0x70] sm:$0xff]  ;;  %v54_v41 = vld [vmem:[#allocation5 + $0x78] sm:$0xff] }
  0x30   :  { %521 = vmatpush3.bf16.msra.mxu1 %v520_v18  ;;  %v532_v42 = vpack.c.bf16 %v143_v38, %v142_v37  ;;  %v144_v43 = vld [vmem:[#allocation5 + $0xe8] sm:$0xff]  ;;  %v145_v44 = vld [vmem:[#allocation5 + $0xf0] sm:$0xff]  ;;  %v514_v45 = vpack.c.bf16 %v54_v41, %v53_v40  ;;  %v38_v47 = vld [vmem:[#allocation2] sm:$0xff] }
  0x31   :  { %522 = vmatprep.subr.bf16.mxu1 %v648_v0  ;;  %v535_v46 = vpack.c.bf16 %v145_v44, %v144_v43  ;;  %v146_v48 = vld [vmem:[#allocation5 + $0xf8] sm:$0xff]  ;;  %v147_v49 = vld [vmem:[#allocation5 + $0x100] sm:$0xff]  ;;  %v225_v51 = vld [vmem:[#allocation5 + $0x110] sm:$0xff] }
  0x32   :  { %500 = vmatpush3.bf16.msra.mxu0 %v499_v14  ;;  %v538_v50 = vpack.c.bf16 %v147_v49, %v146_v48  ;;  %v226_v52 = vld [vmem:[#allocation5 + $0x118] sm:$0xff]  ;;  %v227_v53 = vld [vmem:[#allocation5 + $0x120] sm:$0xff]  ;;  %v228_v55 = vld [vmem:[#allocation5 + $0x128] sm:$0xff] }
  0x33   :  { %501 = vmatprep.subr.bf16.mxu0 %v648_v0  ;;  %v541_v54 = vpack.c.bf16 %v226_v52, %v225_v51  ;;  %v544_v56 = vpack.c.bf16 %v228_v55, %v227_v53  ;;  %v229_v57 = vld [vmem:[#allocation5 + $0x130] sm:$0xff]  ;;  %v230_v58 = vld [vmem:[#allocation5 + $0x138] sm:$0xff]  ;;  %v231_v60 = vld [vmem:[#allocation5 + $0x140] sm:$0xff] }
  0x34   :  { %524 = vmatpush3.bf16.msra.mxu1 %v523_v24  ;;  %v547_v59 = vpack.c.bf16 %v230_v58, %v229_v57  ;;  %v232_v61 = vld [vmem:[#allocation5 + $0x148] sm:$0xff]  ;;  %v233_v63 = vld [vmem:[#allocation5 + $0x150] sm:$0xff]  ;;  %v235_v3 = vld [vmem:[#allocation5 + $0x160] sm:$0xff] }
  0x35   :  { %525 = vmatprep.subr.bf16.mxu1 %v648_v0  ;;  %v550_v62 = vpack.c.bf16 %v232_v61, %v231_v60  ;;  %v236_v4 = vld [vmem:[#allocation5 + $0x168] sm:$0xff]  ;;  %v237_v6 = vld [vmem:[#allocation5 + $0x170] sm:$0xff]  ;;  %v238_v7 = vld [vmem:[#allocation5 + $0x178] sm:$0xff] }
  0x36   :  { %503 = vmatpush3.bf16.msra.mxu0 %v502_v21  ;;  %v556_v5 = vpack.c.bf16 %v236_v4, %v235_v3  ;;  %v559_v8 = vpack.c.bf16 %v238_v7, %v237_v6  ;;  %v333_v9 = vld [vmem:[#allocation5 + $0x80] ss:$0 sm:$0xff]  ;;  %v240_v15 = vld [vmem:[#allocation5 + $0x188] sm:$0xff]  ;;  %v335_v22 = vld [vmem:[#allocation5 + $0x190] ss:$0 sm:$0xff] }
  0x37   :  { %504 = vmatprep.subr.bf16.mxu0 %v648_v0  ;;  %v239_v14 = vld [vmem:[#allocation5 + $0x180] sm:$0xff]  ;;  %v334_v17 = vld [vmem:[#allocation5 + $0x108] ss:$0 sm:$0xff] }
  0x38   :  { %527 = vmatpush3.bf16.msra.mxu1 %v526_v30  ;;  %v562_v16 = vpack.c.bf16 %v240_v15, %v239_v14 }
  0x39   :  { %528 = vmatprep.subr.bf16.mxu1 %v648_v0 }
  0x3a   :  { %506 = vmatpush3.bf16.msra.mxu0 %v505_v27 }
  0x3b   :  { %507 = vmatprep.subr.bf16.mxu0 %v648_v0 }
  0x3c   :  { %530 = vmatpush3.bf16.msra.mxu1 %v529_v36 }
  0x3d   :  { %531 = vmatprep.subr.bf16.mxu1 %v648_v0 }
  0x3e   :  { %509 = vmatpush3.bf16.msra.mxu0 %v508_v33 }
  0x3f   :  { %510 = vmatprep.subr.bf16.mxu0 %v648_v0 }
  0x40   :  { %533 = vmatpush3.bf16.msra.mxu1 %v532_v42 }
  0x41   :  { %534 = vmatprep.subr.bf16.mxu1 %v648_v0 }
  0x42   :  { %512 = vmatpush3.bf16.msra.mxu0 %v511_v39 }
  0x43   :  { %513 = vmatprep.subr.bf16.mxu0 %v648_v0 }
  0x44   :  { %536 = vmatpush3.bf16.msra.mxu1 %v535_v46 }
  0x45   :  { %537 = vmatprep.subr.bf16.mxu1 %v648_v0 }
  0x46   :  { %515 = vmatpush3.bf16.msra.mxu0 %v514_v45 }
  0x47   :  { %540 = vmatprep.subr.bf16.mxu0 %v648_v0 }
  0x48   :  { %539 = vmatpush3.bf16.msra.mxu1 %v538_v50 }
  0x49   :  { %420 = vmatmul.mubr.f32.vlgmr.msra.gmra.mrb[0].mxu0 %v38_v47 }
  0x4a   :  { %489 = vmatprep.mubr.msk.f32.mxu0 %vm649_vm0, %v650_v1  ;;  %542 = vmatpush3.bf16.msra.mxu0 %v541_v54  ;;  %v234_v1 = vld [vmem:[#allocation5 + $0x158] sm:$0xff] }
  0x4b   :  { %543 = vmatprep.subr.bf16.mxu0 %v648_v0  ;;  %v553_v2 = vpack.c.bf16 %v234_v1, %v233_v63 }
  0x4e   :  { %545 = vmatpush3.bf16.msra.mxu0 %v544_v56 }
  0x4f   :  { %546 = vmatprep.subr.bf16.mxu0 %v648_v0 }
  0x52   :  { %548 = vmatpush3.bf16.msra.mxu0 %v547_v59 }
  0x53   :  { %549 = vmatprep.subr.bf16.mxu0 %v648_v0 }
  0x56   :  { %551 = vmatpush3.bf16.msra.mxu0 %v550_v62 }
  0x57   :  { %552 = vmatprep.subr.bf16.mxu0 %v648_v0 }
  0x5a   :  { %554 = vmatpush3.bf16.msra.mxu0 %v553_v2 }
  0x5b   :  { %555 = vmatprep.subr.bf16.mxu0 %v648_v0 }
  0x5e   :  { %557 = vmatpush3.bf16.msra.mxu0 %v556_v5 }
  0x5f   :  { %558 = vmatprep.subr.bf16.mxu0 %v648_v0 }
  0x62   :  { %560 = vmatpush3.bf16.msra.mxu0 %v559_v8 }
  0x63   :  { %561 = vmatprep.subr.bf16.mxu0 %v648_v0 }
  0x66   :  { %563 = vmatpush3.bf16.msra.mxu0 %v562_v16 }
 0x11c   :  { %v126_v10 = vpop.f32.mrb[0].mxu0 }
 0x11d   :  { %v127_v11 = vadd.f32 %v333_v9, %v126_v10  ;;  %v421_v12 = vpop.f32.mrb[1].mxu0 }
 0x11f   :  { %v130_v13 = vmax.f32 %v127_v11, 0.0 }
 0x121   :  { %455 = vmatmul.mubr.f32.vlgmr.msra.gmra.mrb[0].mxu1 %v130_v13 }
 0x1f4   :  { %v219_v18 = vpop.f32.mrb[0].mxu1 }
 0x1f5   :  { %v220_v19 = vadd.f32 %v334_v17, %v219_v18  ;;  %v456_v20 = vpop.f32.mrb[1].mxu1 }
 0x1f7   :  { %v223_v21 = vmax.f32 %v220_v19, 0.0 }
 0x1f9   :  { %490 = vmatmul.mubr.f32.vlgmr.msra.gmra.mrb[2].mxu0 %v223_v21 }
 0x2cc   :  { %v312_v0 = vpop.f32.mrb[2].mxu0 }
 0x2cd   :  { %v313_v23 = vadd.f32 %v335_v22, %v312_v0  ;;  %v491_v24 = vpop.f32.mrb[3].mxu0 }
 0x2cf   :  { %316 = vst [vmem:[#allocation7] sm:$0xff] %v313_v23 }
 0x2d0   :  { %627 = shalt.err (!%p624_p6)
}
 0x2d1   :  { %s628_s10 = scalar_lea.hbm %s742_s2, 128 }
 0x2d2   :  { %p629_p7 = scmp.ne.s32.totalorder %s742_s2, %s628_s10  ;;  %p632_p8 = scmp.lt.u32.totalorder %s628_s10, %s742_s2 }
 0x2d4   :  { %p634_p9 = pnand %p632_p8, %p629_p7 }
 0x2d6   :  { %637 = shalt.err (!%p634_p9)
}
 0x2d7   :  { %326 = dma.vmem_to_hbm [thread:$0]  %s324_s6, 128, %s742_s2, [#allocation4]  }
 0x2d8   :  { %642 = dma.done.wait [#allocation4], 128  }
 0x2d9   :  { %643 = vsyncadd [#allocation4], 4294967168 }
 0x2da   :  { %330 = vsyncpa [#allocation3], 1 }
 0x2db   :  { %331 = vsyncpa [#allocation6], 1 }
 0x2dc   :  { %332 = vsyncpa [#allocation4], 1 }

</bundles_post_ra>
